<compile_context>
chip_gen: v7x
topology: tpu7x:2x2x1
jax: 0.10.0
libtpu: 0.0.40
codegen_flags: <defaults>
</compile_context>

<pallas_src>
import jax
import jax.numpy as jnp
from jax.experimental import pallas as pl
from jax.experimental.pallas import tpu as pltpu

OC, KH, KW = 3, 2, 2
NTAP = KH * KW


def conv_tanh_kernel(wb_ref, x_ref, o_ref):
    # wb_ref: (OC*KH*KW + OC,) f32 SMEM  -- [w(oc,kh,kw) oc-major ..., b(oc)...]
    # x_ref : (NB, H, W)       f32 VMEM  (channel dim squeezed by BlockSpec)
    # o_ref : (NB, OC, OH, OW) f32 VMEM
    nb, oc, oh, ow = o_ref.shape
    x = x_ref[...]

    # Hoist the four shifted slabs -- each slab sliced exactly once.
    slabs = [x[:, kh:kh + oh, kw:kw + ow]
             for kh in range(KH) for kw in range(KW)]        # each (NB, OH, OW)

    # Per output channel: bias folded into tap 0, 4 scalar*vector FMAs from
    # SMEM scalars, one tanh (EUP), one store.
    for c in range(oc):
        acc = wb_ref[OC * NTAP + c] + wb_ref[c * NTAP] * slabs[0]
        for t in range(1, NTAP):
            acc = acc + wb_ref[c * NTAP + t] * slabs[t]
        o_ref[:, c, :, :] = jnp.tanh(acc)


def model_tanh_forward(x_nchw, weight, bias, *, per_step_budget_bytes=10 << 20):
    """x_nchw: (N, 1, H, W), weight: (OC, 1, KH, KW), bias: (OC,)."""
    N, C, H, W = x_nchw.shape
    assert C == 1 and weight.shape == (OC, 1, KH, KW) and bias.shape == (OC,)
    OH, OW = H - KH + 1, W - KW + 1

    x = x_nchw.astype(jnp.float32)

    # Flat SMEM parameter vector: 12 weights (oc-major, kh*KW+kw within) then
    # 3 biases.  1-D SMEM avoids the 2-D (8,128) padding blowup.
    wb = jnp.concatenate([
        weight.astype(jnp.float32).reshape(OC * NTAP),
        bias.astype(jnp.float32).reshape(OC),
    ])

    # Batch-block size: largest NB whose f32 in+out block fits the per-step
    # budget, keeps >= 2 grid steps when N >= 2 (both v7x TensorCores), and
    # divides N exactly (no partial blocks).
    per_img_bytes = 4 * (H * W + OC * OH * OW)
    nb = max(1, min(N, per_step_budget_bytes // max(per_img_bytes, 1)))
    if N >= 2:
        nb = min(nb, (N + 1) // 2)          # keep grid length >= 2
    while N % nb:
        nb -= 1
    grid = (N // nb,)

    # Explicit VMEM ceiling: double-buffered in+out blocks plus headroom,
    # sized to stay well inside v7x's 64 MiB physical VMEM.
    block_bytes = nb * per_img_bytes
    vmem_limit = int(min(100 << 20, max(16 << 20, 4 * block_bytes + (2 << 20))))

    out = pl.pallas_call(
        conv_tanh_kernel,
        out_shape=jax.ShapeDtypeStruct((N, OC, OH, OW), jnp.float32),
        grid=grid,
        in_specs=[
            pl.BlockSpec(memory_space=pltpu.MemorySpace.SMEM),        # weights+bias (flat)
            pl.BlockSpec((nb, None, H, W), lambda i: (i, 0, 0, 0)),   # x (channel squeezed)
        ],
        out_specs=pl.BlockSpec((nb, OC, OH, OW), lambda i: (i, 0, 0, 0)),
        compiler_params=pltpu.CompilerParams(
            dimension_semantics=("parallel",),
            vmem_limit_bytes=vmem_limit),
    )(wb, x)
    return out


if __name__ == "__main__":
    key = jax.random.PRNGKey(0)
    kx, kw_, kb = jax.random.split(key, 3)

    N, H, W = 2, 16, 16
    x = jax.random.normal(kx, (N, 1, H, W), dtype=jnp.float32)

    # Deterministic synthetic parameters (Conv2d(1, 3, kernel_size=(2, 2)))
    fan_in = 1 * KH * KW
    bound = 1.0 / (fan_in ** 0.5)
    weight = jax.random.uniform(kw_, (OC, 1, KH, KW), jnp.float32, -bound, bound)
    bias = jax.random.uniform(kb, (OC,), jnp.float32, -bound, bound)

    out = model_tanh_forward(x, weight, bias)
    out = jax.block_until_ready(out)

    # Reference check against XLA conv + tanh.
    ref = jax.lax.conv_general_dilated(
        x, weight, window_strides=(1, 1), padding="VALID",
        dimension_numbers=("NCHW", "OIHW", "NCHW"))
    ref = jnp.tanh(ref + bias[None, :, None, None])
    assert out.shape == (N, OC, H - 1, W - 1)
    assert jnp.allclose(out, ref, atol=1e-5, rtol=1e-5)

    print("KERNEL_OK")
</pallas_src>

<mosaic_0001>
module attributes {stable_mosaic.version = 11 : i64} {
  func.func @conv_tanh_kernel(%arg0: i32, %arg1: memref<15xf32, #tpu.memory_space<smem>>, %arg2: memref<1x1x16x16xf32, #tpu.memory_space<vmem>>, %arg3: memref<1x3x15x15xf32, #tpu.memory_space<vmem>>) attributes {dimension_semantics = [#tpu.dimension_semantics<parallel>], iteration_bounds = array<i64: 2>, scalar_prefetch = 0 : i64, scratch_operands = 0 : i64, tpu.core_type = #tpu.core_type<tc>, window_params = [{transform_indices = @transform_0, window_bounds = array<i64: 15>}, {transform_indices = @transform_1, window_bounds = array<i64: 1, 1, 16, 16>}, {transform_indices = @transform_2, window_bounds = array<i64: 1, 3, 15, 15>}]} {
    %c0 = arith.constant 0 : index
    %c0_0 = arith.constant 0 : index
    %c0_1 = arith.constant 0 : index
    %c0_2 = arith.constant 0 : index
    %0 = vector.load %arg2[%c0, %c0_0, %c0_1, %c0_2] : memref<1x1x16x16xf32, #tpu.memory_space<vmem>>, vector<1x1x16x16xf32>
    %1 = vector.shape_cast %0 : vector<1x1x16x16xf32> to vector<1x16x16xf32>
    %2 = vector.extract_strided_slice %1 {offsets = [0, 0, 0], sizes = [1, 15, 15], strides = [1, 1, 1]} : vector<1x16x16xf32> to vector<1x15x15xf32>
    %3 = vector.extract_strided_slice %1 {offsets = [0, 0, 1], sizes = [1, 15, 15], strides = [1, 1, 1]} : vector<1x16x16xf32> to vector<1x15x15xf32>
    %4 = vector.extract_strided_slice %1 {offsets = [0, 1, 0], sizes = [1, 15, 15], strides = [1, 1, 1]} : vector<1x16x16xf32> to vector<1x15x15xf32>
    %5 = vector.extract_strided_slice %1 {offsets = [0, 1, 1], sizes = [1, 15, 15], strides = [1, 1, 1]} : vector<1x16x16xf32> to vector<1x15x15xf32>
    %c12 = arith.constant 12 : index
    %6 = memref.load %arg1[%c12] : memref<15xf32, #tpu.memory_space<smem>>
    %c0_3 = arith.constant 0 : index
    %7 = memref.load %arg1[%c0_3] : memref<15xf32, #tpu.memory_space<smem>>
    %8 = vector.broadcast %7 : f32 to vector<1x15x15xf32>
    %9 = arith.mulf %8, %2 : vector<1x15x15xf32>
    %10 = vector.broadcast %6 : f32 to vector<1x15x15xf32>
    %11 = arith.addf %10, %9 : vector<1x15x15xf32>
    %c1 = arith.constant 1 : index
    %12 = memref.load %arg1[%c1] : memref<15xf32, #tpu.memory_space<smem>>
    %13 = vector.broadcast %12 : f32 to vector<1x15x15xf32>
    %14 = arith.mulf %13, %3 : vector<1x15x15xf32>
    %15 = arith.addf %11, %14 : vector<1x15x15xf32>
    %c2 = arith.constant 2 : index
    %16 = memref.load %arg1[%c2] : memref<15xf32, #tpu.memory_space<smem>>
    %17 = vector.broadcast %16 : f32 to vector<1x15x15xf32>
    %18 = arith.mulf %17, %4 : vector<1x15x15xf32>
    %19 = arith.addf %15, %18 : vector<1x15x15xf32>
    %c3 = arith.constant 3 : index
    %20 = memref.load %arg1[%c3] : memref<15xf32, #tpu.memory_space<smem>>
    %21 = vector.broadcast %20 : f32 to vector<1x15x15xf32>
    %22 = arith.mulf %21, %5 : vector<1x15x15xf32>
    %23 = arith.addf %19, %22 : vector<1x15x15xf32>
    %24 = math.tanh %23 : vector<1x15x15xf32>
    %c0_4 = arith.constant 0 : index
    %c0_5 = arith.constant 0 : index
    %c0_6 = arith.constant 0 : index
    %c0_7 = arith.constant 0 : index
    %25 = vector.load %arg3[%c0_4, %c0_5, %c0_6, %c0_7] : memref<1x3x15x15xf32, #tpu.memory_space<vmem>>, vector<1x1x15x15xf32>
    %26 = vector.shape_cast %25 : vector<1x1x15x15xf32> to vector<1x15x15xf32>
    %27 = vector.shape_cast %24 : vector<1x15x15xf32> to vector<1x1x15x15xf32>
    tpu.vector_store %arg3[%c0_4, %c0_5, %c0_6, %c0_7], %27 {strides = array<i32>} : memref<1x3x15x15xf32, #tpu.memory_space<vmem>>, vector<1x1x15x15xf32>,
    %c13 = arith.constant 13 : index
    %28 = memref.load %arg1[%c13] : memref<15xf32, #tpu.memory_space<smem>>
    %c4 = arith.constant 4 : index
    %29 = memref.load %arg1[%c4] : memref<15xf32, #tpu.memory_space<smem>>
    %30 = vector.broadcast %29 : f32 to vector<1x15x15xf32>
    %31 = arith.mulf %30, %2 : vector<1x15x15xf32>
    %32 = vector.broadcast %28 : f32 to vector<1x15x15xf32>
    %33 = arith.addf %32, %31 : vector<1x15x15xf32>
    %c5 = arith.constant 5 : index
    %34 = memref.load %arg1[%c5] : memref<15xf32, #tpu.memory_space<smem>>
    %35 = vector.broadcast %34 : f32 to vector<1x15x15xf32>
    %36 = arith.mulf %35, %3 : vector<1x15x15xf32>
    %37 = arith.addf %33, %36 : vector<1x15x15xf32>
    %c6 = arith.constant 6 : index
    %38 = memref.load %arg1[%c6] : memref<15xf32, #tpu.memory_space<smem>>
    %39 = vector.broadcast %38 : f32 to vector<1x15x15xf32>
    %40 = arith.mulf %39, %4 : vector<1x15x15xf32>
    %41 = arith.addf %37, %40 : vector<1x15x15xf32>
    %c7 = arith.constant 7 : index
    %42 = memref.load %arg1[%c7] : memref<15xf32, #tpu.memory_space<smem>>
    %43 = vector.broadcast %42 : f32 to vector<1x15x15xf32>
    %44 = arith.mulf %43, %5 : vector<1x15x15xf32>
    %45 = arith.addf %41, %44 : vector<1x15x15xf32>
    %46 = math.tanh %45 : vector<1x15x15xf32>
    %c0_8 = arith.constant 0 : index
    %c1_9 = arith.constant 1 : index
    %c0_10 = arith.constant 0 : index
    %c0_11 = arith.constant 0 : index
    %47 = vector.load %arg3[%c0_8, %c1_9, %c0_10, %c0_11] : memref<1x3x15x15xf32, #tpu.memory_space<vmem>>, vector<1x1x15x15xf32>
    %48 = vector.shape_cast %47 : vector<1x1x15x15xf32> to vector<1x15x15xf32>
    %49 = vector.shape_cast %46 : vector<1x15x15xf32> to vector<1x1x15x15xf32>
    tpu.vector_store %arg3[%c0_8, %c1_9, %c0_10, %c0_11], %49 {strides = array<i32>} : memref<1x3x15x15xf32, #tpu.memory_space<vmem>>, vector<1x1x15x15xf32>,
    %c14 = arith.constant 14 : index
    %50 = memref.load %arg1[%c14] : memref<15xf32, #tpu.memory_space<smem>>
    %c8 = arith.constant 8 : index
    %51 = memref.load %arg1[%c8] : memref<15xf32, #tpu.memory_space<smem>>
    %52 = vector.broadcast %51 : f32 to vector<1x15x15xf32>
    %53 = arith.mulf %52, %2 : vector<1x15x15xf32>
    %54 = vector.broadcast %50 : f32 to vector<1x15x15xf32>
    %55 = arith.addf %54, %53 : vector<1x15x15xf32>
    %c9 = arith.constant 9 : index
    %56 = memref.load %arg1[%c9] : memref<15xf32, #tpu.memory_space<smem>>
    %57 = vector.broadcast %56 : f32 to vector<1x15x15xf32>
    %58 = arith.mulf %57, %3 : vector<1x15x15xf32>
    %59 = arith.addf %55, %58 : vector<1x15x15xf32>
    %c10 = arith.constant 10 : index
    %60 = memref.load %arg1[%c10] : memref<15xf32, #tpu.memory_space<smem>>
    %61 = vector.broadcast %60 : f32 to vector<1x15x15xf32>
    %62 = arith.mulf %61, %4 : vector<1x15x15xf32>
    %63 = arith.addf %59, %62 : vector<1x15x15xf32>
    %c11 = arith.constant 11 : index
    %64 = memref.load %arg1[%c11] : memref<15xf32, #tpu.memory_space<smem>>
    %65 = vector.broadcast %64 : f32 to vector<1x15x15xf32>
    %66 = arith.mulf %65, %5 : vector<1x15x15xf32>
    %67 = arith.addf %63, %66 : vector<1x15x15xf32>
    %68 = math.tanh %67 : vector<1x15x15xf32>
    %c0_12 = arith.constant 0 : index
    %c2_13 = arith.constant 2 : index
    %c0_14 = arith.constant 0 : index
    %c0_15 = arith.constant 0 : index
    %69 = vector.load %arg3[%c0_12, %c2_13, %c0_14, %c0_15] : memref<1x3x15x15xf32, #tpu.memory_space<vmem>>, vector<1x1x15x15xf32>
    %70 = vector.shape_cast %69 : vector<1x1x15x15xf32> to vector<1x15x15xf32>
    %71 = vector.shape_cast %68 : vector<1x15x15xf32> to vector<1x1x15x15xf32>
    tpu.vector_store %arg3[%c0_12, %c2_13, %c0_14, %c0_15], %71 {strides = array<i32>} : memref<1x3x15x15xf32, #tpu.memory_space<vmem>>, vector<1x1x15x15xf32>,
    return
  }
  func.func @transform_0(%arg0: i32) -> i32 {
    %c0_i32 = arith.constant 0 : i32
    %c0_i32_0 = arith.constant 0 : i32
    return %c0_i32 : i32
  }
  func.func @transform_1(%arg0: i32) -> (i32, i32, i32, i32) {
    %c0_i32 = arith.constant 0 : i32
    %c0_i32_0 = arith.constant 0 : i32
    %c0_i32_1 = arith.constant 0 : i32
    %c0_i32_2 = arith.constant 0 : i32
    return %arg0, %c0_i32, %c0_i32_0, %c0_i32_1 : i32, i32, i32, i32
  }
  func.func @transform_2(%arg0: i32) -> (i32, i32, i32, i32) {
    %c0_i32 = arith.constant 0 : i32
    %c0_i32_0 = arith.constant 0 : i32
    %c0_i32_1 = arith.constant 0 : i32
    %c0_i32_2 = arith.constant 0 : i32
    return %arg0, %c0_i32, %c0_i32_0, %c0_i32_1 : i32, i32, i32, i32
  }
}

</mosaic_0001>

<bundles_post_ra>
// kernel: tpu_custom_call.1
= control target key start
LH: loop header
LB: loop body
LE: loop exit
PB: predicated region body
PF: predicated region fallthrough
CT: control target
= control target key end

     0   :  { %7 = vsyncpa [#allocation4], 0  ;;  %s827_s0 = inlined_call_operand.hbm [shape: f32[15], index: 0, kind: input, shape index: {}]   ;;  %s828_s1 = inlined_call_operand.hbm [shape: f32[2,1,16,16], index: 1, kind: input, shape index: {}]   ;;  %s829_s2 = inlined_call_operand.vmem [shape: f32[2,3,15,15], index: 2, kind: output, shape index: {}]  }
   0x1   :  { %8 = vsyncpa [#allocation3], 0 }
   0x2   :  { %10 = vsyncpa [#allocation3 + $0x1], 0  ;;  %s631_s9 = smov 0   ;;  %s633_s10 = smov 0  }
   0x3   :  { %s635_s11 = smov 0   ;;  %s637_s12 = smov 0  }
   0x4 LB: > { %s650_s13 = sadd.s32 4294967295, %s609_s12   ;;  %s653_s14 = sadd.s32 1, %s609_s12   ;;  %s609_s12 = sphi %s637_s12, %s841_s12   ;;  %s605_s11 = sphi %s635_s11, %s840_s11   ;;  %s601_s10 = sphi %s633_s10, %s839_s10   ;;  %s597_s9 = sphi %s631_s9, %s838_s9  }
   0x5   : > { %s41_s15 = ssub.s32 %s609_s12, %s653_s14  ;;  %s44_s16 = sadd.s32 1, %s605_s11 }
   0x6   : > { %p42_p0 = scmp.eq.s32.totalorder %s41_s15, 0  ;;  %p51_p1 = scmp.ne.s32.totalorder %s605_s11, %s601_s10 }
   0x7   : > { %p52_p2 = scmp.eq.s32.totalorder %s609_s12, 0  ;;  %p57_p3 = scmp.ne.s32.totalorder %s601_s10, %s597_s9 }
   0x8   : > { %s663_s17 = scalar_select %p42_p0, %s605_s11, %s44_s16  }
   0x9   : > { %p53_p4 = por %p52_p2, %p51_p1  ;;  %p830_p5 = scmp.eq.s32.totalorder %s650_s13, 0 }
   0xa   : > { %p431_p6 = scmp.ge.s32.totalorder %s609_s12, 1  ;;  %p94_p7 = scmp.lt.s32.totalorder %s609_s12, 3 }
   0xb   : > { %p670_p8 = por %p830_p5, %p57_p3  ;;  %p478_p10 = scmp.lt.s32.totalorder %s609_s12, 2 }
   0xc   : > { %p674_p9 = pnand %p431_p6, %p94_p7  ;;  %s116_s20 = sand.u32 1, %s605_s11  }
   0xd   : > { %s832_s18 = scalar_select %p670_p8, 1, 0 }
   0xe   : > { %p469_p11 = pneg %p674_p9  ;;  %p682_p12 = pnand %p478_p10, %p53_p4 }
   0xf   : > { %s434_s22 = sshll.u32 %s116_s20, 4  ;;  %s461_s23 = sshll.u32 %s609_s12, 8 }
  0x10   : > { %p470_p13 = pnand %p469_p11, %p830_p5  ;;  %s528_s26 = scalar_lea.hbm %s827_s0, 16 }
  0x11   : > { %p529_p0 = scmp.ne.s32.totalorder %s827_s0, %s528_s26  ;;  %p535_p4 = scmp.lt.u32.totalorder %s528_s26, %s827_s0 }
  0x12   : > { %p530_p1 = pneg %p470_p13 }
  0x14   : > { %p531_p2 = pnand %p530_p1, %p529_p0 }
  0x16   : > { %p532_p3 = pneg %p531_p2 }
  0x18   : > { %p537_p6 = pnand %p535_p4, %p532_p3 }
  0x1a   : > { %540 = shalt.err (!%p537_p6)
}
  0x1b   : > { %s611_s3 = smov [#allocation2]   ;;  %s704_s8 = scalar_lea.hbm %s828_s1, %s461_s23 }
  0x1c   : > { %472 = dma.hbm_to_smem (!%p470_p13), %s827_s0, 16, %s611_s3, [#allocation4]  }
  0x1d   : > { %s120_s9 = scalar_lea.vmem [#allocation5], %s434_s22  ;;  %s708_s15 = scalar_lea.sflag [#allocation3], %s116_s20 }
  0x1e   : > { %s127_s12 = sshll.u32 %s120_s9, 4  ;;  %s541_s16 = scalar_lea.hbm %s704_s8, 256  ;;  %s706_s12 = int_to_ptr.vmem [resolvable:$true] %s127_s12 }
  0x1f   : > { %p542_p7 = scmp.ne.s32.totalorder %s704_s8, %s541_s16  ;;  %p543_p10 = pneg %p682_p12 }
  0x20   : > { %s546_s25 = scalar_lea.hbm %s828_s1, 512  ;;  %p547_p0 = scmp.lt.u32.totalorder %s704_s8, %s828_s1 }
  0x21   : > { %p544_p11 = pnand %p543_p10, %p542_p7  ;;  %p548_p1 = scmp.lt.u32.totalorder %s546_s25, %s541_s16 }
  0x22   : > { %p550_p3 = scmp.lt.u32.totalorder %s541_s16, %s704_s8 }
  0x23   : > { %p545_p13 = pneg %p544_p11  ;;  %p549_p2 = por %p548_p1, %p547_p0 }
  0x25   : > { %p551_p4 = por %p550_p3, %p549_p2 }
  0x27   : > { %p552_p6 = pnand %p551_p4, %p545_p13 }
  0x29   : > { %555 = shalt.err (!%p552_p6)
}
  0x2a   : > { %s556_s20 = scalar_lea.vmem %s706_s12, 256  ;;  %s612_s22 = smov [#allocation5]  }
  0x2b   : > { %p557_p7 = scmp.ne.s32.totalorder %s706_s12, %s556_s20  ;;  %s561_s28 = sshll.u32 %s612_s22, 4  ;;  %s562_s28 = int_to_ptr.vmem [resolvable:$false] %s561_s28 }
  0x2c   : > { %s563_s29 = scalar_lea.vmem %s562_s28, 512  ;;  %p564_p8 = scmp.lt.s32.totalorder %s706_s12, %s562_s28 }
  0x2d   : > { %p559_p11 = pnand %p557_p7, %p543_p10  ;;  %p565_p0 = scmp.lt.s32.totalorder %s563_s29, %s556_s20 }
  0x2f   : > { %p560_p5 = pneg %p559_p11  ;;  %p566_p1 = por %p565_p0, %p564_p8 }
  0x31   : > { %p567_p2 = pnand %p566_p1, %p560_p5 }
  0x33   : > { %570 = shalt.err (!%p567_p2)
}
  0x34   : > { %s613_s30 = smov 128   ;;  %s614_s3 = smov 8  }
  0x35   : > { %476 = dma.hbm_to_vmem [thread:$0]  (!%p682_p12), %s704_s8, 256, %s706_s12, %s708_s15, %s613_s30, %s613_s30, %s614_s3  }
  0x36   : > { %139 = sbr.rel (%p674_p9) target bundleno = 227 (0xe3), region = 28  ;;  %p835_p10 = scmp.eq.s32.totalorder (!%p674_p9), %s650_s13, 0 }
  0x3d   : > { %588 = dma.done.wait (%p835_p10), [#allocation4], 16   ;;  %p836_p13 = pmov %p835_p10 }
  0x3e   : > { %s145_s4 = sand.u32 1, %s601_s10   ;;  %p837_p5 = scmp.ne.s32.totalorder %s832_s18, 0 }
  0x3f   : > { %590 = vsyncadd (%p836_p13), [#allocation4], 4294967280  ;;  %s439_s5 = sshll.u32 %s145_s4, 4  ;;  %s146_s6 = scalar_lea.sflag [#allocation3], %s145_s4 }
  0x40   : > { %s149_s7 = scalar_lea.vmem [#allocation5], %s439_s5 }
  0x41   : > { %592 = dma.done.wait (%p837_p5), %s146_s6, 256  }
  0x42   : > { %594 = vsyncadd (%p837_p5), %s146_s6, 4294967040 }
  0x43   : > { %154 = sfence }
  0x44   : > { %s447_s19 = sld [smem:[#allocation2 + $0x5]]  ;;  %s442_s21 = sld [smem:[#allocation2 + $0x1]]  ;;  %v747_v0 = vld [vmem:[%s149_s7] sm:$0xff]  ;;  %v749_v1 = vld [vmem:[%s149_s7 + $0x8] sm:$0xff]  ;;  %vm206_vm0 = vcmask 1046528   ;;  %vm235_vm1 = vcmask 120832  }
  0x45   : > { %s454_s8 = sld [smem:[#allocation2 + $0x9]]  ;;  %s444_s9 = sld [smem:[#allocation2 + $0x3]]  ;;  %vm233_vm2 = vcmask 121856  }
  0x46   : > { %s449_s12 = sld [smem:[#allocation2 + $0x7]]  ;;  %s751_s15 = sld [smem:[#allocation2 + $0xb]] }
  0x47   : > { %s443_s18 = sld [smem:[#allocation2 + $0x2]]  ;;  %s615_s16 = smov 127  }
  0x48   : > { %s448_s23 = sld [smem:[#allocation2 + $0x6]]  ;;  %s455_s24 = sld [smem:[#allocation2 + $0xa]] }
  0x49   : > { %s446_s25 = sld [smem:[#allocation2 + $0x4]]  ;;  %s179_s26 = sld [smem:[#allocation2]] }
  0x4a   : > { %v246_v2 = vstv %s447_s19  ;;  %v187_v4 = vstv %s442_s21  ;;  %s445_s27 = sld [smem:[#allocation2 + $0xd]]  ;;  %s441_s20 = sld [smem:[#allocation2 + $0xc]] }
  0x4b   : > { %v247_v3 = vmul.f32 %v246_v2, %v747_v0  ;;  %v188_v5 = vmul.f32 %v187_v4, %v747_v0  ;;  %v248_v6 = vmul.f32 %v246_v2, %v749_v1  ;;  %v215_v7 = vstv %s444_s9  ;;  %s453_s22 = sld [smem:[#allocation2 + $0x8]]  ;;  %s452_s28 = sld [smem:[#allocation2 + $0xe]] }
  0x4c   : > { %v189_v8 = vmul.f32 %v187_v4, %v749_v1  ;;  %v303_v9 = vstv %s454_s8  ;;  %v273_v10 = vstv %s449_s12  ;;  %v217_v11 = vmul.f32 %v215_v7, %v749_v1  ;;  %p171_p8 = scmp.lt.s32.totalorder %s650_s13, 1 }
  0x4d   : > { %251 = vrot.lane.b32.xlu1 %v247_v3, %s615_s16  ;;  %192 = vrot.lane.b32.xlu0 %v188_v5, %s615_s16  ;;  %v216_v12 = vmul.f32 %v215_v7, %v747_v0  ;;  %v305_v13 = vmul.f32 %v303_v9, %v749_v1  ;;  %v275_v14 = vmul.f32 %v273_v10, %v749_v1  ;;  %v330_v16 = vstv %s751_s15 }
  0x4e   : > { %v304_v15 = vmul.f32 %v303_v9, %v747_v0  ;;  %v221_v17 = vrot.slane %v217_v11, 1  ;;  %v274_v19 = vmul.f32 %v273_v10, %v747_v0  ;;  %v201_v20 = vstv %s443_s18  ;;  %s843_s13 = smov (!%p171_p8, %s650_s13), 1 }
  0x4f   : > { %v220_v18 = vrot.slane %v216_v12, 1  ;;  %v279_v21 = vrot.slane %v275_v14, 1  ;;  %v331_v22 = vmul.f32 %v330_v16, %v747_v0  ;;  %v332_v23 = vmul.f32 %v330_v16, %v749_v1  ;;  %s462_s29 = smul.u32 48, %s843_s13 }
  0x50   : > { %v773_v24 = vmul.f32 %v201_v20, %v749_v1  ;;  %v202_v25 = vmul.f32 %v201_v20, %v747_v0  ;;  %v260_v26 = vstv %s448_s23  ;;  %v317_v27 = vstv %s455_s24 }
  0x51   : > { %253 = vrot.lane.b32.xlu1 %v248_v6, %s615_s16  ;;  %194 = vrot.lane.b32.xlu0 %v189_v8, %s615_s16  ;;  %v222_v28 = vsel %vm206_vm0, %v220_v18, %v221_v17  ;;  %v278_v29 = vrot.slane %v274_v19, 1  ;;  %v261_v30 = vmul.f32 %v260_v26, %v747_v0  ;;  %v779_v31 = vmul.f32 %v260_v26, %v749_v1  ;;  %s175_s4 = scalar_lea.vmem %s829_s2, %s462_s29 }
  0x52   : > { %v208_v32 = vrot.slane %v773_v24, 1  ;;  %v207_v33 = vrot.slane %v202_v25, 1  ;;  %v318_v34 = vmul.f32 %v317_v27, %v747_v0  ;;  %v784_v35 = vmul.f32 %v317_v27, %v749_v1 }
  0x53   : > { %v265_v36 = vrot.slane %v261_v30, 1  ;;  %v266_v37 = vrot.slane %v779_v31, 1  ;;  %v280_v41 = vsel %vm206_vm0, %v278_v29, %v279_v21  ;;  %v336_v42 = vrot.slane %v332_v23, 1 }
  0x54   : > { %v209_v38 = vsel %vm206_vm0, %v207_v33, %v208_v32  ;;  %v322_v39 = vrot.slane %v318_v34, 1  ;;  %v323_v40 = vrot.slane %v784_v35, 1  ;;  %v335_v43 = vrot.slane %v331_v22, 1 }
  0x55   : > { %310 = vrot.lane.b32.xlu1 %v305_v13, %s615_s16  ;;  %308 = vrot.lane.b32.xlu0 %v304_v15, %s615_s16  ;;  %v267_v44 = vsel %vm206_vm0, %v265_v36, %v266_v37  ;;  %v239_v47 = vstv %s446_s25  ;;  %v180_v48 = vstv %s179_s26 }
  0x56   : > { %v324_v45 = vsel %vm206_vm0, %v322_v39, %v323_v40  ;;  %v337_v46 = vsel %vm206_vm0, %v335_v43, %v336_v42  ;;  %v240_v49 = vmul.f32 %v239_v47, %v747_v0  ;;  %v242_v50 = vstv %s445_s27 }
  0x57   : > { %v181_v51 = vmul.f32 %v180_v48, %v747_v0  ;;  %v183_v52 = vstv %s441_s20  ;;  %v182_v55 = vmul.f32 %v180_v48, %v749_v1  ;;  %v296_v56 = vstv %s453_s22 }
  0x58   : > { %v243_v53 = vadd.f32 %v242_v50, %v240_v49  ;;  %v297_v61 = vmul.f32 %v296_v56, %v747_v0  ;;  %v241_v62 = vmul.f32 %v239_v47, %v749_v1  ;;  %v299_v2 = vstv %s452_s28 }
  0x59   : > { %225 = vrot.lane.b32.xlu1 %v221_v17, %s615_s16  ;;  %223 = vrot.lane.b32.xlu0 %v222_v28, %s615_s16  ;;  %v184_v54 = vadd.f32 %v183_v52, %v181_v51  ;;  %v185_v63 = vadd.f32 %v183_v52, %v182_v55  ;;  %v298_v10 = vmul.f32 %v296_v56, %v749_v1 }
  0x5a   : > { %v300_v7 = vadd.f32 %v299_v2, %v297_v61  ;;  %v244_v8 = vadd.f32 %v242_v50, %v241_v62 }
  0x5b   : > { %v301_v0 = vadd.f32 %v299_v2, %v298_v10 }
  0x5d   : > { %283 = vrot.lane.b32.xlu1 %v279_v21, %s615_s16  ;;  %281 = vrot.lane.b32.xlu0 %v280_v41, %s615_s16 }
  0x61   : > { %340 = vrot.lane.b32.xlu1 %v336_v42, %s615_s16  ;;  %338 = vrot.lane.b32.xlu0 %v337_v46, %s615_s16 }
  0xbf   : > { %v252_v57 = vpop.permute.xlu1 %251  ;;  %v193_v59 = vpop.permute.xlu0 %192 }
  0xc0   : > { %v257_v58 = vadd.f32 %v252_v57, %v243_v53  ;;  %v198_v60 = vadd.f32 %v193_v59, %v184_v54 }
  0xc2   : > { %v270_v3 = vadd.f32 %v267_v44, %v257_v58  ;;  %v212_v5 = vadd.f32 %v209_v38, %v198_v60 }
  0xc3   : > { %v254_v4 = vpop.permute.xlu1 %253  ;;  %v195_v6 = vpop.permute.xlu0 %194 }
  0xc4   : > { %v199_v9 = vadd.f32 %v195_v6, %v185_v63  ;;  %v258_v14 = vadd.f32 %v254_v4, %v244_v8 }
  0xc6   : > { %v213_v15 = vadd.f32 %v208_v32, %v199_v9  ;;  %v271_v22 = vadd.f32 %v266_v37, %v258_v14 }
  0xc7   : > { %v311_v11 = vpop.permute.xlu1 %310  ;;  %v309_v12 = vpop.permute.xlu0 %308 }
  0xc8   : > { %v314_v13 = vadd.f32 %v309_v12, %v300_v7  ;;  %v315_v21 = vadd.f32 %v311_v11, %v301_v0 }
  0xca   : > { %v327_v17 = vadd.f32 %v324_v45, %v314_v13  ;;  %v328_v26 = vadd.f32 %v323_v40, %v315_v21 }
  0xcb   : > { %v226_v16 = vpop.permute.xlu1 %225  ;;  %v224_v19 = vpop.permute.xlu0 %223 }
  0xcc   : > { %v230_v18 = vadd.f32 %v226_v16, %v213_v15  ;;  %v229_v20 = vadd.f32 %v224_v19, %v212_v5 }
  0xce   : > { %516 = vtanh.f32 %v230_v18 }
  0xcf   : > { %518 = vtanh.f32 %v229_v20  ;;  %v284_v23 = vpop.permute.xlu1 %283  ;;  %v282_v1 = vpop.permute.xlu0 %281 }
  0xd0   : > { %v288_v24 = vadd.f32 %v284_v23, %v271_v22  ;;  %v287_v25 = vadd.f32 %v282_v1, %v270_v3 }
  0xd2   : > { %520 = vtanh.f32 %v288_v24 }
  0xd3   : > { %522 = vtanh.f32 %v287_v25  ;;  %v341_v27 = vpop.permute.xlu1 %340  ;;  %v339_v29 = vpop.permute.xlu0 %338 }
  0xd4   : > { %v345_v28 = vadd.f32 %v341_v27, %v328_v26  ;;  %v344_v30 = vadd.f32 %v339_v29, %v327_v17 }
  0xd6   : > { %524 = vtanh.f32 %v345_v28 }
  0xd7   : > { %526 = vtanh.f32 %v344_v30 }
  0xd8   : > { %v517_v31 = vpop.eup %516 }
  0xd9   : > { %v519_v32 = vpop.eup %518  ;;  %236 = vst.msk [vmem:[%s175_s4 + $0x8] sm:$0x7f] %vm235_vm1, %v517_v31 }
  0xda   : > { %234 = vst.msk [vmem:[%s175_s4] sm:$0xff] %vm233_vm2, %v519_v32 }
  0xdc   : > { %v521_v33 = vpop.eup %520 }
  0xdd   : > { %v523_v34 = vpop.eup %522  ;;  %451 = vst.msk [vmem:[%s175_s4 + $0x18] sm:$0x7f] %vm235_vm1, %v521_v33 }
  0xde   : > { %450 = vst.msk [vmem:[%s175_s4 + $0x10] sm:$0xff] %vm233_vm2, %v523_v34 }
  0xe0   : > { %v525_v35 = vpop.eup %524 }
  0xe1   : > { %v527_v36 = vpop.eup %526  ;;  %458 = vst.msk [vmem:[%s175_s4 + $0x28] sm:$0x7f] %vm235_vm1, %v525_v35 }
  0xe2   : > { %457 = vst.msk [vmem:[%s175_s4 + $0x20] sm:$0xff] %vm233_vm2, %v527_v36 }
  0xe3 PF: > { %p13_p9 = scmp.ge.s32.totalorder %s653_s14, 4   ;;  %s838_s9 = smov %s601_s10 }
  0xe4   : > { %s839_s10 = smov %s605_s11  ;;  %s840_s11 = smov %s663_s17 }
  0xe5   : > { %s841_s12 = smov %s653_s14  ;;  %15 = sbr.rel (!%p13_p9) target bundleno = 4 (0x4), region = 75 }
  0xec   :  { %372 = vsyncpa [#allocation3], 1 }
  0xed   :  { %374 = vsyncpa [#allocation3 + $0x1], 1 }
  0xee   :  { %375 = vsyncpa [#allocation4], 1 }
  0xef   :  { %377 = vsyncpa [#allocation4 + $0x1], 1 }

</bundles_post_ra>
